<compile_context>
chip_gen: v7x
topology: tpu7x:2x2x1
jax: 0.10.0
libtpu: 0.0.40
codegen_flags: <defaults>
</compile_context>

<pallas_src>
import jax
import jax.numpy as jnp
from jax import lax
from jax.experimental import pallas as pl
from jax.experimental.pallas import tpu as pltpu

EPS = 1e-5          # torch InstanceNorm2d default eps
NEG_SLOPE = 0.01    # torch LeakyReLU default negative_slope
_LANE = 128
_LT_TARGET = 512    # target spatial (lane) tile width inside the kernel


def _round_up(a, b):
    return -(-a // b) * b


def _make_kernel(Wp, Lt, num_l_tiles, inv_count):
    """Closure over static ints: padded width Wp, lane-tile Lt, #tiles, 1/#valid positions."""

    def kernel(x_ref, w_ref, mask_ref, o_ref, xcol0_ref, xcol1_ref, conv_ref):
        # x_ref    : (1, Cp, Lx)   bf16  padded image, channel-first, flattened spatial
        # w_ref    : (Ct, 9*Cp)    bf16  conv weights (tap-major K) for this Cout tile
        # mask_ref : (1, L)        f32   1.0 at valid output positions, 0.0 elsewhere
        # o_ref    : (1, Ct, L)    bf16  L = padded stride-1 spatial grid (lane-dense)
        # xcol*_ref: (9*Cp, Lt)    bf16  two on-chip im2col tile slots (rotating)
        # conv_ref : (Ct, L)       f32   un-normalized conv result
        Cp = x_ref.shape[1]
        Ct = o_ref.shape[1]
        xcol = (xcol0_ref, xcol1_ref)

        w = w_ref[...]                                   # hoisted: reused by every L-tile
        s1 = jnp.zeros((Ct, 1), jnp.float32)
        s2 = jnp.zeros((Ct, 1), jnp.float32)

        # Pass 1: per L-tile, build the (9*Cp, Lt) tap matrix on-chip from statically
        # shifted lane-slices (flattened-offset trick) and run ONE deep-K MXU matmul.
        # Alternating xcol slots breaks the build->matmul serialization across tiles.
        for t in range(num_l_tiles):
            xc = xcol[t % 2]
            base = t * Lt
            for ky in range(3):
                for kx in range(3):
                    tap = ky * 3 + kx
                    off = base + ky * Wp + kx            # static lane offset
                    xc[tap * Cp:(tap + 1) * Cp, :] = x_ref[0, :, off:off + Lt]
            acc = jnp.dot(w, xc[...], preferred_element_type=jnp.float32)   # (Ct, Lt)
            conv_ref[:, base:base + Lt] = acc
            m = mask_ref[:, base:base + Lt]              # (1, Lt)
            s1 = s1 + jnp.sum(acc * m, axis=1, keepdims=True)
            s2 = s2 + jnp.sum((acc * acc) * m, axis=1, keepdims=True)

        # InstanceNorm2d(affine=False) statistics in a single fused pass.
        mean = s1 * inv_count
        var = jnp.maximum(s2 * inv_count - mean * mean, 0.0)   # clamp cancellation noise
        inv_std = lax.rsqrt(var + EPS)

        # Pass 2: normalize + LeakyReLU, lane-dense bf16 stores.
        for t in range(num_l_tiles):
            base = t * Lt
            y = (conv_ref[:, base:base + Lt] - mean) * inv_std
            y = jnp.where(y >= 0.0, y, NEG_SLOPE * y)
            o_ref[0, :, base:base + Lt] = y.astype(o_ref.dtype)

    return kernel


def pack_conv_weight(weight, Cin, Cp, Coutp):
    """OIHW (Cout, Cin, 3, 3) -> (Coutp, 9*Cp) bf16, tap-major K (column = tap*Cp + c).
    In a real model this is done ONCE per layer, not per forward call."""
    Cout = int(weight.shape[0])
    wq = jnp.pad(weight.astype(jnp.float32),
                 ((0, Coutp - Cout), (0, Cp - Cin), (0, 0), (0, 0)))
    return jnp.transpose(wq, (0, 2, 3, 1)).reshape(Coutp, 9 * Cp).astype(jnp.bfloat16)


def conv_block_forward(x_nchw, weight, bias=None, stride=1):
    """x_nchw: (N, Cin, H, W); weight: (Cout, Cin, 3, 3) OIHW.
    The conv bias is ignored ON PURPOSE: with InstanceNorm2d(affine=False) the per-channel
    constant is exactly cancelled by the mean subtraction (only valid for affine=False)."""
    N, Cin, H, W = map(int, x_nchw.shape)
    Cout = int(weight.shape[0])
    s = int(stride)

    Hp, Wp = H + 2, W + 2                        # pad = 1
    Ho = (H - 1) // s + 1                        # 3x3, pad 1, stride s output extent
    Wo = (W - 1) // s + 1

    Cp = _round_up(Cin, 16)                      # bf16 sublane packing
    Coutp = _round_up(Cout, 16)
    if Coutp > 256:                              # Cout tiling for very wide layers
        Ct = 256
        Coutp = _round_up(Coutp, Ct)
    else:
        Ct = Coutp

    # Lane-dense spatial grid: stride-1 flattened output (incl. the Wp-W wrap columns),
    # padded up to a multiple of 128 (and of the L-tile width) so every store is unmasked.
    L0 = H * Wp
    if L0 <= _LT_TARGET:
        Lt = _round_up(L0, _LANE)
        L = Lt
    else:
        Lt = _LT_TARGET
        L = _round_up(L0, Lt)
    num_l_tiles = L // Lt
    Lx = _round_up(2 * Wp + 2 + L, _LANE)        # covers max tap offset (2*Wp+2) + L
    assert Lx >= 2 * Wp + 2 + L and Lx >= Hp * Wp, (Lx, Wp, L, Hp * Wp)
    assert L % _LANE == 0 and Lt % _LANE == 0 and L % Lt == 0

    # Input prep: bf16 FIRST (halves pad traffic), one channel+spatial pad, lane pad.
    xb = x_nchw.astype(jnp.bfloat16)
    xp = jnp.pad(xb, ((0, 0), (0, Cp - Cin), (1, 1), (1, 1)))
    xflat = jnp.pad(xp.reshape(N, Cp, Hp * Wp), ((0, 0), (0, 0), (0, Lx - Hp * Wp)))

    wmat = pack_conv_weight(weight, Cin, Cp, Coutp)

    # Validity mask over the flattened stride-1 grid: drop wrap columns, the L-padding
    # tail and (for stride>1) the skipped rows/cols.
    pos = jnp.arange(L, dtype=jnp.int32)
    hh, ww = pos // Wp, pos % Wp
    valid = (ww < W) & (hh < H)
    if s > 1:
        valid = valid & (ww % s == 0) & (hh % s == 0)
    mask = valid.astype(jnp.float32).reshape(1, L)

    kernel = _make_kernel(Wp, Lt, num_l_tiles, 1.0 / float(Ho * Wo))

    # Per-invocation VMEM estimate (double-buffered blocks + scratch) with headroom.
    est = (2 * Cp * Lx * 2 + 2 * Ct * 9 * Cp * 2 + 2 * L * 4
           + 2 * Ct * L * 2 + 2 * 9 * Cp * Lt * 2 + Ct * L * 4)
    vmem_limit = int(min(max(2 * est, 32 * 1024 * 1024), 100 * 1024 * 1024))

    out = pl.pallas_call(
        kernel,
        out_shape=jax.ShapeDtypeStruct((N, Coutp, L), jnp.bfloat16),
        grid=(N, Coutp // Ct),
        in_specs=[
            pl.BlockSpec((1, Cp, Lx), lambda n, j: (n, 0, 0)),
            pl.BlockSpec((Ct, 9 * Cp), lambda n, j: (j, 0)),
            pl.BlockSpec((1, L), lambda n, j: (0, 0)),
        ],
        out_specs=pl.BlockSpec((1, Ct, L), lambda n, j: (n, j, 0)),
        scratch_shapes=[
            pltpu.VMEM((9 * Cp, Lt), jnp.bfloat16),
            pltpu.VMEM((9 * Cp, Lt), jnp.bfloat16),
            pltpu.VMEM((Ct, L), jnp.float32),
        ],
        compiler_params=pltpu.CompilerParams(
            dimension_semantics=("parallel", "parallel"),
            vmem_limit_bytes=vmem_limit,
        ),
    )(xflat, wmat, mask)

    # Drop padded channels / wrap columns / padding tail / skipped stride positions.
    # Result is already NCHW (lane-dense output) -- no transpose.
    # TODO(synk): for stride>1 a compact strided writeback would need phase-deinterleaved
    # input planes; the masked stride-1 grid wastes ~s^2 conv FLOPs + output bytes.
    out = out[:, :Cout, :H * Wp].reshape(N, Cout, H, Wp)[:, :, ::s, 0:W:s]
    return out


def _reference(x, weight, bias, stride=1):
    """Pure-JAX f32 reference of the ConvBlock forward."""
    y = lax.conv_general_dilated(
        x.astype(jnp.float32), weight.astype(jnp.float32),
        window_strides=(stride, stride), padding=((1, 1), (1, 1)),
        dimension_numbers=('NCHW', 'OIHW', 'NCHW'))
    y = y + bias[None, :, None, None].astype(jnp.float32)
    mean = y.mean(axis=(2, 3), keepdims=True)
    var = ((y - mean) ** 2).mean(axis=(2, 3), keepdims=True)
    y = (y - mean) / jnp.sqrt(var + EPS)
    return jnp.where(y >= 0, y, NEG_SLOPE * y)


if __name__ == "__main__":
    # ConvBlock(fi_in=4, fi_out=8, dim='2D', strides=1 and 2)
    N, Cin, Cout, H, W = 2, 4, 8, 16, 16

    key = jax.random.PRNGKey(0)
    kx_, kw_, kb_ = jax.random.split(key, 3)
    x = jax.random.normal(kx_, (N, Cin, H, W), dtype=jnp.float32)
    weight = 0.1 * jax.random.normal(kw_, (Cout, Cin, 3, 3), dtype=jnp.float32)
    bias = 0.1 * jax.random.normal(kb_, (Cout,), dtype=jnp.float32)

    for stride in (1, 2):
        out = jax.block_until_ready(conv_block_forward(x, weight, bias, stride=stride))
        Ho = (H - 1) // stride + 1
        Wo = (W - 1) // stride + 1
        assert out.shape == (N, Cout, Ho, Wo), out.shape
        assert out.dtype == jnp.bfloat16
        out_f32 = out.astype(jnp.float32)

        # strict check vs. a reference fed the same bf16-quantized inputs
        # (isolates kernel math; differences are f32 accumulation order + bf16 output cast)
        xq = x.astype(jnp.bfloat16).astype(jnp.float32)
        wq = weight.astype(jnp.bfloat16).astype(jnp.float32)
        ref_q = jax.block_until_ready(_reference(xq, wq, bias, stride=stride))
        assert jnp.allclose(out_f32, ref_q, atol=3e-2, rtol=3e-2), \
            float(jnp.max(jnp.abs(out_f32 - ref_q)))

        # loose sanity check vs. the full-f32 reference (bf16 input quantization noise)
        ref = jax.block_until_ready(_reference(x, weight, bias, stride=stride))
        assert jnp.allclose(out_f32, ref, atol=1e-1, rtol=1e-1), \
            float(jnp.max(jnp.abs(out_f32 - ref)))

    print("KERNEL_OK")
</pallas_src>

<mosaic_0001>
module attributes {stable_mosaic.version = 11 : i64} {
  func.func @kernel(%arg0: i32, %arg1: i32, %arg2: memref<1x16x512xbf16, #tpu.memory_space<vmem>>, %arg3: memref<16x144xbf16, #tpu.memory_space<vmem>>, %arg4: memref<1x384xf32, #tpu.memory_space<vmem>>, %arg5: memref<1x16x384xbf16, #tpu.memory_space<vmem>>, %arg6: memref<144x384xbf16, #tpu.memory_space<vmem>>, %arg7: memref<144x384xbf16, #tpu.memory_space<vmem>>, %arg8: memref<16x384xf32, #tpu.memory_space<vmem>>) attributes {dimension_semantics = [#tpu.dimension_semantics<parallel>, #tpu.dimension_semantics<parallel>], iteration_bounds = array<i64: 2, 1>, scalar_prefetch = 0 : i64, scratch_operands = 3 : i64, tpu.core_type = #tpu.core_type<tc>, window_params = [{transform_indices = @transform_0, window_bounds = array<i64: 1, 16, 512>}, {transform_indices = @transform_1, window_bounds = array<i64: 16, 144>}, {pipeline_mode = #tpu.pipeline_mode<synchronous>, transform_indices = @transform_2, window_bounds = array<i64: 1, 384>}, {transform_indices = @transform_3, window_bounds = array<i64: 1, 16, 384>}]} {
    %c0 = arith.constant 0 : index
    %c0_0 = arith.constant 0 : index
    %0 = vector.load %arg3[%c0, %c0_0] : memref<16x144xbf16, #tpu.memory_space<vmem>>, vector<16x144xbf16>
    %cst = arith.constant 0.000000e+00 : f32
    %1 = vector.broadcast %cst : f32 to vector<16x1xf32>
    %cst_1 = arith.constant 0.000000e+00 : f32
    %2 = vector.broadcast %cst_1 : f32 to vector<16x1xf32>
    %c0_2 = arith.constant 0 : index
    %c0_3 = arith.constant 0 : index
    %c0_4 = arith.constant 0 : index
    %3 = vector.load %arg2[%c0_2, %c0_3, %c0_4] : memref<1x16x512xbf16, #tpu.memory_space<vmem>>, vector<1x16x384xbf16>
    %4 = vector.shape_cast %3 : vector<1x16x384xbf16> to vector<16x384xbf16>
    %c0_5 = arith.constant 0 : index
    %c0_6 = arith.constant 0 : index
    %5 = vector.load %arg6[%c0_5, %c0_6] : memref<144x384xbf16, #tpu.memory_space<vmem>>, vector<16x384xbf16>
    tpu.vector_store %arg6[%c0_5, %c0_6], %4 {strides = array<i32>} : memref<144x384xbf16, #tpu.memory_space<vmem>>, vector<16x384xbf16>,
    %c0_7 = arith.constant 0 : index
    %c0_8 = arith.constant 0 : index
    %c1 = arith.constant 1 : index
    %6 = vector.load %arg2[%c0_7, %c0_8, %c1] : memref<1x16x512xbf16, #tpu.memory_space<vmem>>, vector<1x16x384xbf16>
    %7 = vector.shape_cast %6 : vector<1x16x384xbf16> to vector<16x384xbf16>
    %c16 = arith.constant 16 : index
    %c0_9 = arith.constant 0 : index
    %8 = vector.load %arg6[%c16, %c0_9] : memref<144x384xbf16, #tpu.memory_space<vmem>>, vector<16x384xbf16>
    tpu.vector_store %arg6[%c16, %c0_9], %7 {strides = array<i32>} : memref<144x384xbf16, #tpu.memory_space<vmem>>, vector<16x384xbf16>,
    %c0_10 = arith.constant 0 : index
    %c0_11 = arith.constant 0 : index
    %c2 = arith.constant 2 : index
    %9 = vector.load %arg2[%c0_10, %c0_11, %c2] : memref<1x16x512xbf16, #tpu.memory_space<vmem>>, vector<1x16x384xbf16>
    %10 = vector.shape_cast %9 : vector<1x16x384xbf16> to vector<16x384xbf16>
    %c32 = arith.constant 32 : index
    %c0_12 = arith.constant 0 : index
    %11 = vector.load %arg6[%c32, %c0_12] : memref<144x384xbf16, #tpu.memory_space<vmem>>, vector<16x384xbf16>
    tpu.vector_store %arg6[%c32, %c0_12], %10 {strides = array<i32>} : memref<144x384xbf16, #tpu.memory_space<vmem>>, vector<16x384xbf16>,
    %c0_13 = arith.constant 0 : index
    %c0_14 = arith.constant 0 : index
    %c18 = arith.constant 18 : index
    %12 = vector.load %arg2[%c0_13, %c0_14, %c18] : memref<1x16x512xbf16, #tpu.memory_space<vmem>>, vector<1x16x384xbf16>
    %13 = vector.shape_cast %12 : vector<1x16x384xbf16> to vector<16x384xbf16>
    %c48 = arith.constant 48 : index
    %c0_15 = arith.constant 0 : index
    %14 = vector.load %arg6[%c48, %c0_15] : memref<144x384xbf16, #tpu.memory_space<vmem>>, vector<16x384xbf16>
    tpu.vector_store %arg6[%c48, %c0_15], %13 {strides = array<i32>} : memref<144x384xbf16, #tpu.memory_space<vmem>>, vector<16x384xbf16>,
    %c0_16 = arith.constant 0 : index
    %c0_17 = arith.constant 0 : index
    %c19 = arith.constant 19 : index
    %15 = vector.load %arg2[%c0_16, %c0_17, %c19] : memref<1x16x512xbf16, #tpu.memory_space<vmem>>, vector<1x16x384xbf16>
    %16 = vector.shape_cast %15 : vector<1x16x384xbf16> to vector<16x384xbf16>
    %c64 = arith.constant 64 : index
    %c0_18 = arith.constant 0 : index
    %17 = vector.load %arg6[%c64, %c0_18] : memref<144x384xbf16, #tpu.memory_space<vmem>>, vector<16x384xbf16>
    tpu.vector_store %arg6[%c64, %c0_18], %16 {strides = array<i32>} : memref<144x384xbf16, #tpu.memory_space<vmem>>, vector<16x384xbf16>,
    %c0_19 = arith.constant 0 : index
    %c0_20 = arith.constant 0 : index
    %c20 = arith.constant 20 : index
    %18 = vector.load %arg2[%c0_19, %c0_20, %c20] : memref<1x16x512xbf16, #tpu.memory_space<vmem>>, vector<1x16x384xbf16>
    %19 = vector.shape_cast %18 : vector<1x16x384xbf16> to vector<16x384xbf16>
    %c80 = arith.constant 80 : index
    %c0_21 = arith.constant 0 : index
    %20 = vector.load %arg6[%c80, %c0_21] : memref<144x384xbf16, #tpu.memory_space<vmem>>, vector<16x384xbf16>
    tpu.vector_store %arg6[%c80, %c0_21], %19 {strides = array<i32>} : memref<144x384xbf16, #tpu.memory_space<vmem>>, vector<16x384xbf16>,
    %c0_22 = arith.constant 0 : index
    %c0_23 = arith.constant 0 : index
    %c36 = arith.constant 36 : index
    %21 = vector.load %arg2[%c0_22, %c0_23, %c36] : memref<1x16x512xbf16, #tpu.memory_space<vmem>>, vector<1x16x384xbf16>
    %22 = vector.shape_cast %21 : vector<1x16x384xbf16> to vector<16x384xbf16>
    %c96 = arith.constant 96 : index
    %c0_24 = arith.constant 0 : index
    %23 = vector.load %arg6[%c96, %c0_24] : memref<144x384xbf16, #tpu.memory_space<vmem>>, vector<16x384xbf16>
    tpu.vector_store %arg6[%c96, %c0_24], %22 {strides = array<i32>} : memref<144x384xbf16, #tpu.memory_space<vmem>>, vector<16x384xbf16>,
    %c0_25 = arith.constant 0 : index
    %c0_26 = arith.constant 0 : index
    %c37 = arith.constant 37 : index
    %24 = vector.load %arg2[%c0_25, %c0_26, %c37] : memref<1x16x512xbf16, #tpu.memory_space<vmem>>, vector<1x16x384xbf16>
    %25 = vector.shape_cast %24 : vector<1x16x384xbf16> to vector<16x384xbf16>
    %c112 = arith.constant 112 : index
    %c0_27 = arith.constant 0 : index
    %26 = vector.load %arg6[%c112, %c0_27] : memref<144x384xbf16, #tpu.memory_space<vmem>>, vector<16x384xbf16>
    tpu.vector_store %arg6[%c112, %c0_27], %25 {strides = array<i32>} : memref<144x384xbf16, #tpu.memory_space<vmem>>, vector<16x384xbf16>,
    %c0_28 = arith.constant 0 : index
    %c0_29 = arith.constant 0 : index
    %c38 = arith.constant 38 : index
    %27 = vector.load %arg2[%c0_28, %c0_29, %c38] : memref<1x16x512xbf16, #tpu.memory_space<vmem>>, vector<1x16x384xbf16>
    %28 = vector.shape_cast %27 : vector<1x16x384xbf16> to vector<16x384xbf16>
    %c128 = arith.constant 128 : index
    %c0_30 = arith.constant 0 : index
    %29 = vector.load %arg6[%c128, %c0_30] : memref<144x384xbf16, #tpu.memory_space<vmem>>, vector<16x384xbf16>
    tpu.vector_store %arg6[%c128, %c0_30], %28 {strides = array<i32>} : memref<144x384xbf16, #tpu.memory_space<vmem>>, vector<16x384xbf16>,
    %c0_31 = arith.constant 0 : index
    %c0_32 = arith.constant 0 : index
    %30 = vector.load %arg6[%c0_31, %c0_32] : memref<144x384xbf16, #tpu.memory_space<vmem>>, vector<144x384xbf16>
    %cst_33 = arith.constant dense<0.000000e+00> : vector<16x384xf32>
    %31 = tpu.matmul %0, %30, %cst_33 {dimension_numbers = #tpu.dot_dimension_numbers<[1], [0], [0], [1], [0, 0, 1, 1], [], []>} : vector<16x144xbf16>, vector<144x384xbf16>, vector<16x384xf32> -> vector<16x384xf32>
    %c0_34 = arith.constant 0 : index
    %c0_35 = arith.constant 0 : index
    %32 = vector.load %arg8[%c0_34, %c0_35] : memref<16x384xf32, #tpu.memory_space<vmem>>, vector<16x384xf32>
    tpu.vector_store %arg8[%c0_34, %c0_35], %31 {strides = array<i32>} : memref<16x384xf32, #tpu.memory_space<vmem>>, vector<16x384xf32>,
    %c0_36 = arith.constant 0 : index
    %c0_37 = arith.constant 0 : index
    %33 = vector.load %arg4[%c0_36, %c0_37] : memref<1x384xf32, #tpu.memory_space<vmem>>, vector<1x384xf32>
    %34 = vector.broadcast %33 : vector<1x384xf32> to vector<16x384xf32>
    %35 = arith.mulf %31, %34 : vector<16x384xf32>
    %cst_38 = arith.constant dense<0.000000e+00> : vector<16xf32>
    %36 = vector.multi_reduction <add>, %35, %cst_38 [1] : vector<16x384xf32> to vector<16xf32>
    %37 = vector.shape_cast %36 : vector<16xf32> to vector<16x1xf32>
    %38 = arith.addf %1, %37 : vector<16x1xf32>
    %39 = arith.mulf %31, %31 : vector<16x384xf32>
    %40 = vector.broadcast %33 : vector<1x384xf32> to vector<16x384xf32>
    %41 = arith.mulf %39, %40 : vector<16x384xf32>
    %cst_39 = arith.constant dense<0.000000e+00> : vector<16xf32>
    %42 = vector.multi_reduction <add>, %41, %cst_39 [1] : vector<16x384xf32> to vector<16xf32>
    %43 = vector.shape_cast %42 : vector<16xf32> to vector<16x1xf32>
    %44 = arith.addf %2, %43 : vector<16x1xf32>
    %cst_40 = arith.constant 3.906250e-03 : f32
    %45 = vector.broadcast %cst_40 : f32 to vector<16x1xf32>
    %46 = arith.mulf %38, %45 : vector<16x1xf32>
    %cst_41 = arith.constant 3.906250e-03 : f32
    %47 = vector.broadcast %cst_41 : f32 to vector<16x1xf32>
    %48 = arith.mulf %44, %47 : vector<16x1xf32>
    %49 = arith.mulf %46, %46 : vector<16x1xf32>
    %50 = arith.subf %48, %49 : vector<16x1xf32>
    %cst_42 = arith.constant 0.000000e+00 : f32
    %51 = vector.broadcast %cst_42 : f32 to vector<16x1xf32>
    %52 = arith.maximumf %50, %51 : vector<16x1xf32>
    %cst_43 = arith.constant 9.99999974E-6 : f32
    %53 = vector.broadcast %cst_43 : f32 to vector<16x1xf32>
    %54 = arith.addf %52, %53 : vector<16x1xf32>
    %55 = math.rsqrt %54 : vector<16x1xf32>
    %c0_44 = arith.constant 0 : index
    %c0_45 = arith.constant 0 : index
    %56 = vector.load %arg8[%c0_44, %c0_45] : memref<16x384xf32, #tpu.memory_space<vmem>>, vector<16x384xf32>
    %57 = vector.broadcast %46 : vector<16x1xf32> to vector<16x384xf32>
    %58 = arith.subf %56, %57 : vector<16x384xf32>
    %59 = vector.broadcast %55 : vector<16x1xf32> to vector<16x384xf32>
    %60 = arith.mulf %58, %59 : vector<16x384xf32>
    %cst_46 = arith.constant 0.000000e+00 : f32
    %61 = vector.broadcast %cst_46 : f32 to vector<16x384xf32>
    %62 = arith.cmpf oge, %60, %61 : vector<16x384xf32>
    %cst_47 = arith.constant 0.00999999977 : f32
    %63 = vector.broadcast %cst_47 : f32 to vector<16x384xf32>
    %64 = arith.mulf %63, %60 : vector<16x384xf32>
    %65 = arith.select %62, %60, %64 : vector<16x384xi1>, vector<16x384xf32>
    %66 = arith.truncf %65 : vector<16x384xf32> to vector<16x384xbf16>
    %c0_48 = arith.constant 0 : index
    %c0_49 = arith.constant 0 : index
    %c0_50 = arith.constant 0 : index
    %67 = vector.load %arg5[%c0_48, %c0_49, %c0_50] : memref<1x16x384xbf16, #tpu.memory_space<vmem>>, vector<1x16x384xbf16>
    %68 = vector.shape_cast %67 : vector<1x16x384xbf16> to vector<16x384xbf16>
    %69 = vector.shape_cast %66 : vector<16x384xbf16> to vector<1x16x384xbf16>
    tpu.vector_store %arg5[%c0_48, %c0_49, %c0_50], %69 {strides = array<i32>} : memref<1x16x384xbf16, #tpu.memory_space<vmem>>, vector<1x16x384xbf16>,
    return
  }
  func.func @transform_0(%arg0: i32, %arg1: i32) -> (i32, i32, i32) {
    %c0_i32 = arith.constant 0 : i32
    %c0_i32_0 = arith.constant 0 : i32
    %c0_i32_1 = arith.constant 0 : i32
    return %arg0, %c0_i32, %c0_i32_0 : i32, i32, i32
  }
  func.func @transform_1(%arg0: i32, %arg1: i32) -> (i32, i32) {
    %c0_i32 = arith.constant 0 : i32
    %c0_i32_0 = arith.constant 0 : i32
    return %arg1, %c0_i32 : i32, i32
  }
  func.func @transform_2(%arg0: i32, %arg1: i32) -> (i32, i32) {
    %c0_i32 = arith.constant 0 : i32
    %c0_i32_0 = arith.constant 0 : i32
    %c0_i32_1 = arith.constant 0 : i32
    return %c0_i32, %c0_i32_0 : i32, i32
  }
  func.func @transform_3(%arg0: i32, %arg1: i32) -> (i32, i32, i32) {
    %c0_i32 = arith.constant 0 : i32
    %c0_i32_0 = arith.constant 0 : i32
    return %arg0, %arg1, %c0_i32 : i32, i32, i32
  }
}

</mosaic_0001>

<bundles_post_ra>
// kernel: tpu_custom_call.1
= control target key start
LH: loop header
LB: loop body
LE: loop exit
PB: predicated region body
PF: predicated region fallthrough
CT: control target
= control target key end

     0   :  { %8 = vsyncpa [#allocation6], 0  ;;  %s1525_s0 = inlined_call_operand.hbm [shape: bf16[2,16,512], index: 0, kind: input, shape index: {}]   ;;  %s1526_s1 = inlined_call_operand.hbm [shape: bf16[16,144], index: 1, kind: input, shape index: {}]   ;;  %s1527_s2 = inlined_call_operand.vmem [shape: f32[1,384], index: 2, kind: input, shape index: {}]   ;;  %s1528_s3 = inlined_call_operand.hbm [shape: bf16[2,16,384], index: 3, kind: output, shape index: {}]  }
   0x1   :  { %10 = vsyncpa [#allocation6 + $0x1], 0 }
   0x2   :  { %11 = vsyncpa [#allocation9], 0 }
   0x3   :  { %12 = vsyncpa [#allocation7], 0 }
   0x4   :  { %14 = vsyncpa [#allocation7 + $0x1], 0  ;;  %s1281_s12 = smov 0   ;;  %s1283_s13 = smov 0  }
   0x5   :  { %s1285_s14 = smov 0   ;;  %s1287_s15 = smov 0  }
   0x6   :  { %s1289_s16 = smov 0   ;;  %s1291_s17 = smov 0  }
   0x7 LB: > { %s931_s18 = sadd.s32 4294967295, %s1241_s17   ;;  %s932_s19 = sadd.s32 4294967294, %s1241_s17   ;;  %s1241_s17 = sphi %s1291_s17, %s20_s17   ;;  %s1237_s16 = sphi %s1289_s16, %s1552_s16   ;;  %s1233_s15 = sphi %s1287_s15, %s1551_s15   ;;  %s1229_s14 = sphi %s1285_s14, %s1550_s14   ;;  %s1225_s13 = sphi %s1283_s13, %s1549_s13   ;;  %s1221_s12 = sphi %s1281_s12, %s1548_s12  }
   0x8   : > { %p52_p0 = scmp.ne.s32.totalorder %s1225_s13, %s1221_s12  ;;  %p1315_p1 = scmp.eq.s32.totalorder %s931_s18, 0 }
   0x9   : > { %p1319_p2 = scmp.eq.s32.totalorder %s931_s18, 1  ;;  %p131_p3 = scmp.eq.s32.totalorder %s932_s19, 1 }
   0xa   : > { %s1533_s20 = scalar_select %p1315_p1, 1, 0 }
   0xb   : > { %s1534_s21 = scalar_select %p1319_p2, 1, 0 }
   0xc   : > { %p1325_p4 = por %p1315_p1, %p52_p0  ;;  %p933_p5 = scmp.ge.s32.totalorder %s1241_s17, 1 }
   0xd   : > { %p1330_p6 = por %p131_p3, %p52_p0  ;;  %p138_p7 = scmp.lt.s32.totalorder %s1241_s17, 3 }
   0xe   : > { %s1535_s22 = scalar_select %p1325_p4, 1, 0 }
   0xf   : > { %s1536_s23 = scalar_select %p1330_p6, 1, 0 }
  0x10   : > { %p1335_p8 = pnand %p933_p5, %p138_p7  ;;  %s1243_s25 = smov [#allocation8]  }
  0x11   : > { %s154_s26 = sshll.u32 %s1243_s25, 4  ;;  %s32_s28 = sadd.s32 1, %s1237_s16  ;;  %s155_s26 = int_to_ptr.vmem [resolvable:$true] %s154_s26 }
  0x12   : > { %s1537_s24 = scalar_select %p1335_p8, 1, 0 }
  0x13   : > { %p1003_p9 = pneg %p1335_p8  ;;  %s1097_s4 = scalar_lea.hbm %s1526_s1, 256 }
  0x14   : > { %p1098_p12 = scmp.ne.s32.totalorder %s1526_s1, %s1097_s4  ;;  %p1104_p5 = scmp.lt.u32.totalorder %s1097_s4, %s1526_s1 }
  0x15   : > { %p1344_p11 = pnand %p1003_p9, %p1315_p1 }
  0x17   : > { %p1099_p13 = pneg %p1344_p11 }
  0x19   : > { %p1100_p0 = pnand %p1099_p13, %p1098_p12 }
  0x1b   : > { %p1101_p3 = pneg %p1100_p0 }
  0x1d   : > { %p1106_p7 = pnand %p1104_p5, %p1101_p3 }
  0x1f   : > { %1109 = shalt.err (!%p1106_p7)
}
  0x20   : > { %s1110_s9 = scalar_lea.vmem %s155_s26, 256  ;;  %p1118_p1 = scmp.lt.s32.totalorder %s155_s26, %s155_s26 }
  0x21   : > { %p1111_p9 = scmp.ne.s32.totalorder %s155_s26, %s1110_s9  ;;  %p1119_p4 = scmp.lt.s32.totalorder %s1110_s9, %s1110_s9 }
  0x23   : > { %p1113_p10 = pnand %p1111_p9, %p1099_p13  ;;  %p1120_p8 = por %p1119_p4, %p1118_p1 }
  0x25   : > { %p1114_p6 = pneg %p1113_p10 }
  0x27   : > { %p1121_p2 = pnand %p1120_p8, %p1114_p6 }
  0x29   : > { %1124 = shalt.err (!%p1121_p2)
}
  0x2a   : > { %s1244_s10 = smov 128   ;;  %s1245_s11 = smov 8  }
  0x2b   : > { %1006 = dma.hbm_to_vmem [thread:$0]  (!%p1344_p11), %s1526_s1, 256, %s155_s26, [#allocation9], %s1244_s10, %s1244_s10, %s1245_s11  }
  0x2c   : > { %p34_p1 = scmp.ge.s32.totalorder %s32_s28, 2  ;;  %s39_s25 = sadd.s32 1, %s1229_s14 }
  0x2d   : > { %p46_p2 = scmp.ne.s32.totalorder %s1229_s14, %s1225_s13  ;;  %p47_p4 = scmp.eq.s32.totalorder %s1241_s17, 0 }
  0x2e   : > { %s1554_s28 = smov (%p34_p1, %s32_s28), 0  ;;  %p1540_p8 = scmp.ne.s32.totalorder %s1534_s21, 0 }
  0x2f   : > { %p1371_p6 = por %p47_p4, %p46_p2  ;;  %s36_s27 = ssub.s32 %s1237_s16, %s1554_s28 }
  0x30   : > { %p1377_p10 = por %p1540_p8, %p46_p2  ;;  %p1016_p12 = scmp.lt.s32.totalorder %s1241_s17, 2 }
  0x31   : > { %p37_p11 = scmp.eq.s32.totalorder %s36_s27, 0  ;;  %s171_s26 = sand.u32 1, %s1229_s14  }
  0x32   : > { %s936_s4 = sshll.u32 %s171_s26, 5  ;;  %s988_s6 = sshll.u32 %s1237_s16, 9 }
  0x33   : > { %s1386_s5 = scalar_select %p37_p11, %s1229_s14, %s39_s25  }
  0x34   : > { %s1392_s9 = scalar_lea.hbm %s1525_s0, %s988_s6  ;;  %s175_s21 = scalar_lea.vmem [#allocation5], %s936_s4 }
  0x35   : > { %s182_s10 = sshll.u32 %s175_s21, 4  ;;  %p1398_p13 = pnand %p1016_p12, %p1371_p6  ;;  %s1394_s10 = int_to_ptr.vmem [resolvable:$true] %s182_s10 }
  0x36   : > { %s1402_s18 = scalar_lea.sflag [#allocation6], %s171_s26  ;;  %s1125_s19 = scalar_lea.hbm %s1392_s9, 512 }
  0x37   : > { %p1126_p0 = scmp.ne.s32.totalorder %s1392_s9, %s1125_s19  ;;  %p1127_p3 = pneg %p1398_p13 }
  0x38   : > { %s1130_s29 = scalar_lea.hbm %s1525_s0, 1024  ;;  %p1131_p9 = scmp.lt.u32.totalorder %s1392_s9, %s1525_s0 }
  0x39   : > { %p1128_p5 = pnand %p1127_p3, %p1126_p0  ;;  %p1132_p1 = scmp.lt.u32.totalorder %s1130_s29, %s1125_s19 }
  0x3a   : > { %p1134_p4 = scmp.lt.u32.totalorder %s1125_s19, %s1392_s9 }
  0x3b   : > { %p1129_p7 = pneg %p1128_p5  ;;  %p1133_p2 = por %p1132_p1, %p1131_p9 }
  0x3d   : > { %p1135_p6 = por %p1134_p4, %p1133_p2 }
  0x3f   : > { %p1136_p8 = pnand %p1135_p6, %p1129_p7 }
  0x41   : > { %1139 = shalt.err (!%p1136_p8)
}
  0x42   : > { %s1140_s26 = scalar_lea.vmem %s1394_s10, 512  ;;  %s1246_s7 = smov [#allocation5]  }
  0x43   : > { %p1141_p12 = scmp.ne.s32.totalorder %s1394_s10, %s1140_s26  ;;  %s1145_s8 = sshll.u32 %s1246_s7, 4  ;;  %s1146_s8 = int_to_ptr.vmem [resolvable:$false] %s1145_s8 }
  0x44   : > { %s1147_s21 = scalar_lea.vmem %s1146_s8, 1024  ;;  %p1148_p5 = scmp.lt.s32.totalorder %s1394_s10, %s1146_s8 }
  0x45   : > { %p1143_p11 = pnand %p1141_p12, %p1127_p3  ;;  %p1149_p9 = scmp.lt.s32.totalorder %s1147_s21, %s1140_s26 }
  0x47   : > { %p1144_p0 = pneg %p1143_p11  ;;  %p1150_p1 = por %p1149_p9, %p1148_p5 }
  0x49   : > { %p1151_p2 = pnand %p1150_p1, %p1144_p0 }
  0x4b   : > { %1154 = shalt.err (!%p1151_p2)
}
  0x4c   : > { %s1247_s19 = smov 256   ;;  %s1248_s25 = smov 16  }
  0x4d   : > { %1010 = dma.hbm_to_vmem [thread:$0]  (!%p1398_p13), %s1392_s9, 512, %s1394_s10, %s1402_s18, %s1247_s19, %s1247_s19, %s1248_s25  }
  0x4e   : > { %p1543_p3 = scmp.ne.s32.totalorder %s1537_s24, 0 }
  0x4f   : > { %s1433_s27 = sand.u32 (!%p1543_p3), 1, %s1225_s13   ;;  %p1544_p7 = scmp.ne.s32.totalorder (!%p1543_p3), %s1535_s22, 0 }
  0x50   : > { %194 = sbr.rel (%p1543_p3) target bundleno = 681 (0x2a9), region = 32  ;;  %s940_s29 = sshll.u32 (!%p1543_p3), %s1433_s27, 5 }
  0x51   : > { %s197_s4 = scalar_lea.sflag (!%p1543_p3), [#allocation6], %s1433_s27  ;;  %s200_s6 = scalar_lea.vmem (!%p1543_p3), [#allocation5], %s940_s29 }
  0x57   : > { %1208 = dma.done.wait (%p1544_p7), %s197_s4, 512  }
  0x58   : > { %1210 = vsyncadd (%p1544_p7), %s197_s4, 4294966784  ;;  %p1545_p4 = scmp.ne.s32.totalorder %s1533_s20, 0 }
  0x5a   : > { %1212 = dma.done.wait (%p1545_p4), [#allocation9], 256  }
  0x5b   : > { %1214 = vsyncadd (%p1545_p4), [#allocation9], 4294967040  ;;  %v1249_v0 = vmov 0   ;;  %v1083_v1 = vld [vmem:[%s200_s6 + $0x4] ss:$16 sps:$4 sm:$0xff]   ;;  %s1250_s24 = smov 127  }
  0x5c   : > { %642 = vmatprep.subr.bf16.mxu1 %v1249_v0  ;;  %v1085_v2 = vld [vmem:[%s200_s6] ss:$16 sps:$4 sm:$0xff]   ;;  %277 = vrot.lane.b32.xlu0 %v1083_v1, %s1250_s24  ;;  %v1086_v3 = vld [vmem:[%s200_s6 + $0x8] ss:$16 sps:$4 sm:$0xff]   ;;  %v1088_v4 = vld [vmem:[%s200_s6 + $0xc] ss:$16 sps:$4 sm:$0xff]  }
  0x5d   : > { %599 = vmatprep.subr.bf16.mxu0 %v1083_v1  ;;  %275 = vrot.lane.b32.xlu1 %v1085_v2, %s1250_s24  ;;  %v1089_v5 = vld [vmem:[%s200_s6 + $0x8] ss:$16 sps:$4 sm:$0xff]   ;;  %s1251_s20 = smov 126   ;;  %s1252_s22 = smov 110   ;;  %v1092_v6 = vld [vmem:[#allocation8 + $0x4] ss:$8 sps:$4 sm:$0xff]  }
  0x5e   : > { %600 = vmatpush1.bf16.msra.mxu0 %v1085_v2  ;;  %643 = vmatpush1.bf16.msra.mxu1 %v1089_v5  ;;  %s1253_s9 = smov 109   ;;  %s1254_s10 = smov 108   ;;  %vm595_vm0 = vcmask 130048   ;;  %vm283_vm1 = vcmask 1039360   ;;  %vm321_vm2 = vcmask 1031168   ;;  %vm359_vm3 = vcmask 900096  }
  0x5f   : > { %644 = vmatprep.subr.bf16.mxu1 %v1249_v0  ;;  %s1255_s11 = smov 92   ;;  %s1256_s18 = smov 91   ;;  %979 = vmatprep.mubr.msk.bf16.mxu0 %vm595_vm0, %v1092_v6  ;;  %vm397_vm4 = vcmask 891904   ;;  %vm435_vm5 = vcmask 883712   ;;  %vm473_vm6 = vcmask 752640   ;;  %vm511_vm7 = vcmask 744448  }
  0x60   : > { %279 = vrot.lane.b32.xlu0 %v1086_v3, %s1250_s24  ;;  %980 = vmatprep.mubr.msk.bf16.mxu1 %vm595_vm0, %v1092_v6  ;;  %s1257_s26 = smov 90   ;;  %vm549_vm8 = vcmask 736256   ;;  %v1090_v62 = vld [vmem:[#allocation8] ss:$8 sps:$4 sm:$0xff]   ;;  %s993_s21 = smul.u32 24, %s1433_s27 }
  0x61   : > { %281 = vrot.lane.b32.xlu1 %v1088_v4, %s1250_s24  ;;  %s994_s19 = smul.u32 384, %s1233_s15  ;;  %s819_s24 = scalar_lea.sflag [#allocation7], %s1433_s27 }
  0x62   : > { %s226_s25 = scalar_lea.vmem [#allocation10], %s993_s21 }
  0x63   : > { %s835_s29 = sshll.u32 %s226_s25, 4  ;;  %s1474_s6 = scalar_lea.hbm %s1528_s3, %s994_s19  ;;  %s1476_s29 = int_to_ptr.vmem [resolvable:$true] %s835_s29 }
  0x64   : > { %315 = vrot.lane.b32.xlu0 %v1083_v1, %s1251_s20 }
  0x65   : > { %317 = vrot.lane.b32.xlu1 %v1086_v3, %s1251_s20 }
  0x68   : > { %313 = vrot.lane.b32.xlu0 %v1085_v2, %s1251_s20 }
  0x69   : > { %319 = vrot.lane.b32.xlu1 %v1088_v4, %s1251_s20  ;;  %s1155_s20 = scalar_lea.vmem %s1476_s29, 384 }
  0x6a   : > { %p1156_p13 = scmp.ne.s32.totalorder %s1476_s29, %s1155_s20 }
  0x6c   : > { %353 = vrot.lane.b32.xlu0 %v1083_v1, %s1252_s22  ;;  %p1157_p6 = pnand %p1156_p13, %p1377_p10 }
  0x6d   : > { %355 = vrot.lane.b32.xlu1 %v1086_v3, %s1252_s22 }
  0x6e   : > { %p1158_p8 = pneg %p1157_p6 }
  0x70   : > { %351 = vrot.lane.b32.xlu0 %v1085_v2, %s1252_s22 }
  0x71   : > { %357 = vrot.lane.b32.xlu1 %v1088_v4, %s1252_s22  ;;  %s1258_s22 = smov [#allocation10]  }
  0x74   : > { %391 = vrot.lane.b32.xlu0 %v1083_v1, %s1253_s9 }
  0x75   : > { %393 = vrot.lane.b32.xlu1 %v1086_v3, %s1253_s9 }
  0x78   : > { %389 = vrot.lane.b32.xlu0 %v1085_v2, %s1253_s9 }
  0x79   : > { %395 = vrot.lane.b32.xlu1 %v1088_v4, %s1253_s9  ;;  %s1159_s9 = sshll.u32 %s1258_s22, 4  ;;  %s1160_s9 = int_to_ptr.vmem [resolvable:$false] %s1159_s9 }
  0x7a   : > { %p1162_p12 = scmp.lt.s32.totalorder %s1476_s29, %s1160_s9 }
  0x7c   : > { %429 = vrot.lane.b32.xlu0 %v1083_v1, %s1254_s10 }
  0x7d   : > { %431 = vrot.lane.b32.xlu1 %v1086_v3, %s1254_s10 }
  0x80   : > { %427 = vrot.lane.b32.xlu0 %v1085_v2, %s1254_s10 }
  0x81   : > { %433 = vrot.lane.b32.xlu1 %v1088_v4, %s1254_s10  ;;  %s1161_s10 = scalar_lea.vmem %s1160_s9, 768 }
  0x82   : > { %p1163_p11 = scmp.lt.s32.totalorder %s1161_s10, %s1155_s20 }
  0x84   : > { %467 = vrot.lane.b32.xlu0 %v1083_v1, %s1255_s11  ;;  %p1164_p0 = por %p1163_p11, %p1162_p12 }
  0x85   : > { %469 = vrot.lane.b32.xlu1 %v1086_v3, %s1255_s11 }
  0x86   : > { %p1165_p5 = pnand %p1164_p0, %p1158_p8 }
  0x88   : > { %465 = vrot.lane.b32.xlu0 %v1085_v2, %s1255_s11 }
  0x89   : > { %471 = vrot.lane.b32.xlu1 %v1088_v4, %s1255_s11 }
  0x8c   : > { %505 = vrot.lane.b32.xlu0 %v1083_v1, %s1256_s18 }
  0x8d   : > { %507 = vrot.lane.b32.xlu1 %v1086_v3, %s1256_s18 }
  0x90   : > { %503 = vrot.lane.b32.xlu0 %v1085_v2, %s1256_s18 }
  0x91   : > { %509 = vrot.lane.b32.xlu1 %v1088_v4, %s1256_s18 }
  0x94   : > { %543 = vrot.lane.b32.xlu0 %v1083_v1, %s1257_s26  ;;  %v691_v1 = vlaneseq }
  0x95   : > { %545 = vrot.lane.b32.xlu1 %v1086_v3, %s1257_s26 }
  0x98   : > { %541 = vrot.lane.b32.xlu0 %v1085_v2, %s1257_s26  ;;  %v692_v2 = vshrl.u32 %v691_v1, 7 }
  0x99   : > { %547 = vrot.lane.b32.xlu1 %v1088_v4, %s1257_s26  ;;  %v689_v4 = vld [vmem:[%s1527_s2] sm:$0x7] }
  0x9a   : > { %v693_v3 = vsub.s32 0, %v692_v2  ;;  %v701_v5 = vsub.s32 2, %v692_v2 }
  0x9c   : > { %v694_v6 = vrot.slane %v689_v4, %v693_v3 }
  0xce   : > { %v278_v7 = vpop.permute.xlu0 %277 }
  0xcf   : > { %v276_v8 = vpop.permute.xlu1 %275 }
  0xd0   : > { %v284_v13 = vsel %vm283_vm1, %v276_v8, %v278_v7  ;;  %v702_v8 = vrot.slane %v689_v4, %v701_v5 }
  0xd2   : > { %v280_v9 = vpop.permute.xlu0 %279 }
  0xd3   : > { %v282_v10 = vpop.permute.xlu1 %281  ;;  %v285_v11 = vsel %vm283_vm1, %v278_v7, %v280_v9 }
  0xd4   : > { %601 = vmatprep.subr.bf16.mxu0 %v285_v11  ;;  %v286_v12 = vsel %vm283_vm1, %v280_v9, %v282_v10 }
  0xd5   : > { %645 = vmatpush1.bf16.msra.mxu1 %v286_v12  ;;  %602 = vmatpush1.bf16.msra.mxu0 %v284_v13 }
  0xd6   : > { %v316_v14 = vpop.permute.xlu0 %315  ;;  %646 = vmatprep.subr.bf16.mxu1 %v1249_v0 }
  0xd7   : > { %v318_v15 = vpop.permute.xlu1 %317 }
  0xd8   : > { %v323_v16 = vsel %vm321_vm2, %v316_v14, %v318_v15 }
  0xd9   : > { %603 = vmatprep.subr.bf16.mxu0 %v323_v16 }
  0xda   : > { %v314_v17 = vpop.permute.xlu0 %313 }
  0xdb   : > { %v320_v18 = vpop.permute.xlu1 %319  ;;  %v322_v19 = vsel %vm321_vm2, %v314_v17, %v316_v14 }
  0xdc   : > { %604 = vmatpush1.bf16.msra.mxu0 %v322_v19  ;;  %v324_v20 = vsel %vm321_vm2, %v318_v15, %v320_v18 }
  0xdd   : > { %647 = vmatpush1.bf16.msra.mxu1 %v324_v20 }
  0xde   : > { %v354_v21 = vpop.permute.xlu0 %353  ;;  %648 = vmatprep.subr.bf16.mxu1 %v1249_v0 }
  0xdf   : > { %v356_v22 = vpop.permute.xlu1 %355 }
  0xe0   : > { %v361_v23 = vsel %vm359_vm3, %v354_v21, %v356_v22 }
  0xe1   : > { %605 = vmatprep.subr.bf16.mxu0 %v361_v23 }
  0xe2   : > { %v352_v24 = vpop.permute.xlu0 %351 }
  0xe3   : > { %v358_v25 = vpop.permute.xlu1 %357  ;;  %v360_v26 = vsel %vm359_vm3, %v352_v24, %v354_v21 }
  0xe4   : > { %606 = vmatpush1.bf16.msra.mxu0 %v360_v26  ;;  %v362_v27 = vsel %vm359_vm3, %v356_v22, %v358_v25 }
  0xe5   : > { %649 = vmatpush1.bf16.msra.mxu1 %v362_v27 }
  0xe6   : > { %v392_v28 = vpop.permute.xlu0 %391  ;;  %650 = vmatprep.subr.bf16.mxu1 %v1249_v0 }
  0xe7   : > { %v394_v29 = vpop.permute.xlu1 %393 }
  0xe8   : > { %v399_v30 = vsel %vm397_vm4, %v392_v28, %v394_v29 }
  0xe9   : > { %607 = vmatprep.subr.bf16.mxu0 %v399_v30 }
  0xea   : > { %v390_v31 = vpop.permute.xlu0 %389 }
  0xeb   : > { %v396_v32 = vpop.permute.xlu1 %395  ;;  %v398_v33 = vsel %vm397_vm4, %v390_v31, %v392_v28 }
  0xec   : > { %608 = vmatpush1.bf16.msra.mxu0 %v398_v33  ;;  %v400_v34 = vsel %vm397_vm4, %v394_v29, %v396_v32 }
  0xed   : > { %651 = vmatpush1.bf16.msra.mxu1 %v400_v34 }
  0xee   : > { %v430_v35 = vpop.permute.xlu0 %429  ;;  %652 = vmatprep.subr.bf16.mxu1 %v1249_v0 }
  0xef   : > { %v432_v36 = vpop.permute.xlu1 %431 }
  0xf0   : > { %v437_v37 = vsel %vm435_vm5, %v430_v35, %v432_v36 }
  0xf1   : > { %609 = vmatprep.subr.bf16.mxu0 %v437_v37 }
  0xf2   : > { %v428_v38 = vpop.permute.xlu0 %427 }
  0xf3   : > { %v434_v39 = vpop.permute.xlu1 %433  ;;  %v436_v40 = vsel %vm435_vm5, %v428_v38, %v430_v35 }
  0xf4   : > { %610 = vmatpush1.bf16.msra.mxu0 %v436_v40  ;;  %v438_v41 = vsel %vm435_vm5, %v432_v36, %v434_v39 }
  0xf5   : > { %653 = vmatpush1.bf16.msra.mxu1 %v438_v41 }
  0xf6   : > { %v468_v42 = vpop.permute.xlu0 %467  ;;  %654 = vmatprep.subr.bf16.mxu1 %v1249_v0 }
  0xf7   : > { %v470_v43 = vpop.permute.xlu1 %469 }
  0xf8   : > { %v475_v44 = vsel %vm473_vm6, %v468_v42, %v470_v43 }
  0xf9   : > { %611 = vmatprep.subr.bf16.mxu0 %v475_v44 }
  0xfa   : > { %v466_v45 = vpop.permute.xlu0 %465 }
  0xfb   : > { %v472_v46 = vpop.permute.xlu1 %471  ;;  %v474_v47 = vsel %vm473_vm6, %v466_v45, %v468_v42 }
  0xfc   : > { %612 = vmatpush1.bf16.msra.mxu0 %v474_v47  ;;  %v476_v48 = vsel %vm473_vm6, %v470_v43, %v472_v46 }
  0xfd   : > { %655 = vmatpush1.bf16.msra.mxu1 %v476_v48 }
  0xfe   : > { %v506_v49 = vpop.permute.xlu0 %505  ;;  %656 = vmatprep.subr.bf16.mxu1 %v1249_v0 }
  0xff   : > { %v508_v50 = vpop.permute.xlu1 %507 }
 0x100   : > { %v513_v51 = vsel %vm511_vm7, %v506_v49, %v508_v50 }
 0x101   : > { %613 = vmatprep.subr.bf16.mxu0 %v513_v51 }
 0x102   : > { %v504_v52 = vpop.permute.xlu0 %503 }
 0x103   : > { %v510_v53 = vpop.permute.xlu1 %509  ;;  %v512_v54 = vsel %vm511_vm7, %v504_v52, %v506_v49 }
 0x104   : > { %614 = vmatpush1.bf16.msra.mxu0 %v512_v54  ;;  %v514_v55 = vsel %vm511_vm7, %v508_v50, %v510_v53 }
 0x105   : > { %657 = vmatpush1.bf16.msra.mxu1 %v514_v55 }
 0x106   : > { %v544_v56 = vpop.permute.xlu0 %543  ;;  %658 = vmatprep.subr.bf16.mxu1 %v1249_v0  ;;  %v697_v0 = vsub.s32 1, %v692_v2 }
 0x107   : > { %v546_v57 = vpop.permute.xlu1 %545 }
 0x108   : > { %v551_v58 = vsel %vm549_vm8, %v544_v56, %v546_v57  ;;  %v698_v7 = vrot.slane %v689_v4, %v697_v0 }
 0x109   : > { %615 = vmatprep.subr.bf16.mxu0 %v551_v58 }
 0x10a   : > { %v542_v59 = vpop.permute.xlu0 %541 }
 0x10b   : > { %v548_v60 = vpop.permute.xlu1 %547  ;;  %v550_v61 = vsel %vm549_vm8, %v542_v59, %v544_v56 }
 0x10c   : > { %616 = vmatpush1.bf16.msra.mxu0 %v550_v61  ;;  %v552_v63 = vsel %vm549_vm8, %v546_v57, %v548_v60 }
 0x10d   : > { %659 = vmatpush1.bf16.msra.mxu1 %v552_v63 }
 0x10f   : > { %632 = vmatmul.mubr.bf16.vlgmr.msra.gmra.mrb[0].mxu0 %v1090_v62 }
 0x110   : > { %675 = vmatmul.mubr.bf16.vlgmr.msra.gmra.mrb[0].mxu1 %v1090_v62 }
 0x1e2   : > { %v633_v9 = vpop.f32.mrb[0].mxu0 }
 0x1e3   : > { %v706_v10 = vmul.f32 %v694_v6, %v633_v9  ;;  %v722_v11 = vmul.f32 %v633_v9, %v633_v9  ;;  %v676_v12 = vpop.f32.mrb[0].mxu1  ;;  %v635_v13 = vpop.f32.mrb[1].mxu0 }
 0x1e4   : > { %v724_v14 = vmul.f32 %v676_v12, %v676_v12  ;;  %v707_v15 = vmul.f32 %v698_v7, %v635_v13  ;;  %v723_v16 = vmul.f32 %v635_v13, %v635_v13  ;;  %v678_v17 = vpop.f32.mrb[1].mxu1  ;;  %v1457_v18 = vpop.f32.mrb[2].mxu0  ;;  %v708_v19 = vmul.f32 %v702_v8, %v676_v12 }
 0x1e5   : > { %v709_v20 = vmul.f32 %v694_v6, %v1457_v18  ;;  %v725_v21 = vmul.f32 %v1457_v18, %v1457_v18  ;;  %v1462_v22 = vpop.f32.mrb[2].mxu1  ;;  %v639_v23 = vpop.f32.mrb[3].mxu0  ;;  %v728_v24 = vmul.f32 %v722_v11, %v694_v6 }
 0x1e6   : > { %v727_v25 = vmul.f32 %v1462_v22, %v1462_v22  ;;  %v710_v26 = vmul.f32 %v698_v7, %v639_v23  ;;  %v726_v27 = vmul.f32 %v639_v23, %v639_v23  ;;  %v681_v28 = vpop.f32.mrb[3].mxu1  ;;  %v712_v29 = vadd.f32 %v707_v15, %v706_v10 }
 0x1e7   : > { %v729_v30 = vmul.f32 %v723_v16, %v698_v7  ;;  %v730_v31 = vmul.f32 %v724_v14, %v702_v8  ;;  %v731_v32 = vmul.f32 %v725_v21, %v694_v6  ;;  %v711_v35 = vmul.f32 %v702_v8, %v1462_v22 }
 0x1e8   : > { %v732_v33 = vmul.f32 %v726_v27, %v698_v7  ;;  %v713_v34 = vadd.f32 %v712_v29, %v708_v19  ;;  %v716_v36 = vadd.f32 %v710_v26, %v709_v20  ;;  %v733_v39 = vmul.f32 %v727_v25, %v702_v8 }
 0x1e9   : > { %v734_v37 = vadd.f32 %v729_v30, %v728_v24 }
 0x1ea   : > { %714 = vadd.xlane.f32.xlu0 %v713_v34  ;;  %v717_v38 = vadd.f32 %v716_v36, %v711_v35  ;;  %v738_v40 = vadd.f32 %v732_v33, %v731_v32 }
 0x1eb   : > { %v735_v41 = vadd.f32 %v734_v37, %v730_v31 }
 0x1ec   : > { %718 = vadd.xlane.f32.xlu1 %v717_v38  ;;  %v739_v42 = vadd.f32 %v738_v40, %v733_v39 }
 0x1ee   : > { %736 = vadd.xlane.f32.xlu0 %v735_v41 }
 0x1f2   : > { %740 = vadd.xlane.f32.xlu0 %v739_v42 }
 0x277   : > { %v715_v43 = vpop.xlane.xlu0 %714 }
 0x278   : > { %v744_v44 = vmul.f32 0.00390625, %v715_v43 }
 0x279   : > { %v719_v45 = vpop.xlane.xlu1 %718 }
 0x27a   : > { %v745_v47 = vmul.f32 0.00390625, %v719_v45  ;;  %v748_v48 = vmul.f32 %v744_v44, %v744_v44  ;;  %v764_v59 = vsub.f32 %v633_v9, %v744_v44  ;;  %v765_v60 = vsub.f32 %v635_v13, %v744_v44 }
 0x27b   : > { %v737_v46 = vpop.xlane.xlu0 %736  ;;  %v766_v61 = vsub.f32 %v676_v12, %v744_v44 }
 0x27c   : > { %v746_v49 = vmul.f32 0.00390625, %v737_v46  ;;  %v749_v54 = vmul.f32 %v745_v47, %v745_v47  ;;  %v767_v3 = vsub.f32 %v1457_v18, %v745_v47  ;;  %v768_v4 = vsub.f32 %v639_v23, %v745_v47 }
 0x27d   : > { %v769_v0 = vsub.f32 %v1462_v22, %v745_v47 }
 0x27e   : > { %v750_v50 = vsub.f32 %v746_v49, %v748_v48 }
 0x27f   : > { %v741_v51 = vpop.xlane.xlu0 %740 }
 0x280   : > { %v752_v52 = vmax.f32 %v750_v50, 0.0  ;;  %v747_v53 = vmul.f32 0.00390625, %v741_v51 }
 0x282   : > { %v754_v55 = vadd.f32 1e-05, %v752_v52  ;;  %v751_v56 = vsub.f32 %v747_v53, %v749_v54 }
 0x284   : > { %1093 = vrsqrt.f32 %v754_v55  ;;  %v753_v57 = vmax.f32 %v751_v56, 0.0 }
 0x286   : > { %v755_v58 = vadd.f32 1e-05, %v753_v57 }
 0x288   : > { %1095 = vrsqrt.f32 %v755_v58 }
 0x28e   : > { %v1094_v62 = vpop.eup %1093 }
 0x28f   : > { %v770_v63 = vmul.f32 %v1094_v62, %v764_v59  ;;  %v771_v1 = vmul.f32 %v1094_v62, %v765_v60  ;;  %v772_v2 = vmul.f32 %v1094_v62, %v766_v61 }
 0x291   : > { %v782_v5 = vmul.f32 0.01, %v770_v63  ;;  %v783_v6 = vmul.f32 0.01, %v771_v1  ;;  %v784_v7 = vmul.f32 0.01, %v772_v2 }
 0x292   : > { %v1096_v8 = vpop.eup %1095  ;;  %vm776_vm9 = vcmp.ge.f32.partialorder %v770_v63, 0.0  ;;  %vm777_vm10 = vcmp.ge.f32.partialorder %v771_v1, 0.0  ;;  %vm778_vm11 = vcmp.ge.f32.partialorder %v772_v2, 0.0 }
 0x293   : > { %v773_v9 = vmul.f32 %v1096_v8, %v767_v3  ;;  %v774_v10 = vmul.f32 %v1096_v8, %v768_v4  ;;  %v775_v11 = vmul.f32 %v1096_v8, %v769_v0  ;;  %v788_v12 = vsel %vm776_vm9, %v770_v63, %v782_v5 }
 0x294   : > { %v789_v13 = vsel %vm777_vm10, %v771_v1, %v783_v6  ;;  %v790_v14 = vsel %vm778_vm11, %v772_v2, %v784_v7 }
 0x295   : > { %v785_v15 = vmul.f32 0.01, %v773_v9  ;;  %v786_v16 = vmul.f32 0.01, %v774_v10  ;;  %v787_v17 = vmul.f32 0.01, %v775_v11  ;;  %v989_v18 = vpack.c.bf16 %v789_v13, %v788_v12 }
 0x296   : > { %vm779_vm12 = vcmp.ge.f32.partialorder %v773_v9, 0.0  ;;  %vm780_vm13 = vcmp.ge.f32.partialorder %v774_v10, 0.0  ;;  %vm781_vm14 = vcmp.ge.f32.partialorder %v775_v11, 0.0  ;;  %v990_v19 = vpack.c.bf16 %v790_v14, %v790_v14 }
 0x297   : > { %v791_v20 = vsel %vm779_vm12, %v773_v9, %v785_v15  ;;  %v792_v21 = vsel %vm780_vm13, %v774_v10, %v786_v16  ;;  %v793_v22 = vsel %vm781_vm14, %v775_v11, %v787_v17  ;;  %814 = vst [vmem:[%s226_s25] sm:$0xff] %v989_v18 }
 0x298   : > { %v991_v23 = vpack.c.bf16 %v792_v21, %v791_v20  ;;  %v992_v24 = vpack.c.bf16 %v793_v22, %v793_v22  ;;  %815 = vst [vmem:[%s226_s25 + $0x8] sm:$0xf] %v990_v19 }
 0x29a   : > { %816 = vst [vmem:[%s226_s25 + $0xc] sm:$0xff] %v991_v23  ;;  %817 = vst [vmem:[%s226_s25 + $0x14] sm:$0xf] %v992_v24 }
 0x29b   : > { %1168 = shalt.err (!%p1165_p5)
}
 0x29c   : > { %s1169_s11 = scalar_lea.hbm %s1474_s6, 384  ;;  %s1173_s7 = scalar_lea.hbm %s1528_s3, 768 }
 0x29d   : > { %p1170_p9 = scmp.ne.s32.totalorder %s1474_s6, %s1169_s11  ;;  %p1174_p3 = scmp.lt.u32.totalorder %s1474_s6, %s1528_s3 }
 0x29e   : > { %p1175_p7 = scmp.lt.u32.totalorder %s1173_s7, %s1169_s11  ;;  %p1177_p13 = scmp.lt.u32.totalorder %s1169_s11, %s1474_s6 }
 0x29f   : > { %p1171_p1 = pnand %p1170_p9, %p1377_p10 }
 0x2a0   : > { %p1176_p4 = por %p1175_p7, %p1174_p3 }
 0x2a1   : > { %p1172_p2 = pneg %p1171_p1 }
 0x2a2   : > { %p1178_p6 = por %p1177_p13, %p1176_p4 }
 0x2a4   : > { %p1179_p8 = pnand %p1178_p6, %p1172_p2 }
 0x2a6   : > { %1182 = shalt.err (!%p1179_p8)
}
 0x2a7   : > { %s1259_s19 = smov 192   ;;  %s1260_s25 = smov 12  }
 0x2a8   : > { %1001 = dma.vmem_to_hbm [thread:$0]  (%p1377_p10), %s1476_s29, 384, %s1474_s6, %s819_s24, %s1259_s19, %s1259_s19, %s1260_s25  }
 0x2a9 PF: > { %s850_s4 = sand.u32 1, %s1221_s12   ;;  %p1546_p12 = scmp.ne.s32.totalorder %s1536_s23, 0 }
 0x2aa   : > { %p1547_p11 = scmp.ge.s32.totalorder %s1241_s17, 2  ;;  %s851_s15 = scalar_lea.sflag [#allocation7], %s850_s4 }
 0x2ac   : > { %p1012_p0 = pnand %p1547_p11, %p1546_p12 }
 0x2ae   : > { %1216 = dma.done.wait (!%p1012_p0), %s851_s15, 384  }
 0x2af   : > { %1218 = vsyncadd (!%p1012_p0), %s851_s15, 4294966912  ;;  %s20_s17 = sadd.s32 1, %s1241_s17   ;;  %s1548_s12 = smov %s1225_s13 }
 0x2b0   : > { %p17_p5 = scmp.ge.s32.totalorder %s20_s17, 4   ;;  %s1549_s13 = smov %s1229_s14 }
 0x2b1   : > { %s1550_s14 = smov %s1386_s5  ;;  %s1551_s15 = smov %s1237_s16 }
 0x2b2   : > { %s1552_s16 = smov %s1554_s28  ;;  %19 = sbr.rel (!%p17_p5) target bundleno = 7 (0x7), region = 82 }
 0x2b9   :  { %856 = vsyncpa [#allocation6], 1 }
 0x2ba   :  { %858 = vsyncpa [#allocation6 + $0x1], 1 }
 0x2bb   :  { %859 = vsyncpa [#allocation9], 1 }
 0x2bc   :  { %860 = vsyncpa [#allocation7], 1 }
 0x2bd   :  { %862 = vsyncpa [#allocation7 + $0x1], 1 }

</bundles_post_ra>
